<compile_context>
chip_gen: v7x
topology: tpu7x:2x2x1
jax: 0.10.0
libtpu: 0.0.40
codegen_flags: <defaults>
</compile_context>

<pallas_src>
import jax
import jax.numpy as jnp
from jax.experimental import pallas as pl
from jax.experimental.pallas import tpu as pltpu


def _resolve_view_shape(total, shape):
    """Resolve a single -1 and validate, matching torch.Tensor.view."""
    shape = list(shape)
    neg = [i for i, s in enumerate(shape) if s == -1]
    if len(neg) > 1:
        raise ValueError(f"only one -1 allowed in view shape, got {tuple(shape)}")
    if neg:
        known = 1
        for s in shape:
            if s != -1:
                if s < 0:
                    raise ValueError(f"invalid dimension {s} in view shape {tuple(shape)}")
                known *= s
        if known == 0 or total % known != 0:
            raise ValueError(f"cannot view {total} elements as {tuple(shape)}")
        shape[neg[0]] = total // known
    out_total = 1
    for s in shape:
        out_total *= s
    if out_total != total:
        raise ValueError(f"cannot view {total} elements as {tuple(shape)}")
    return tuple(shape)


# ---- flat chunk layout for the (optional) materializing copy ---------------
#
# Chunks are contiguous byte ranges of the flattened slab; the 2-D
# factorisation below only defines chunk boundaries (HBM->HBM DMA does not
# care about lane width), so a wide last dim is used merely to keep row counts
# small.
_LANE_CANDIDATES = (8192, 4096, 2048, 1024, 512, 256, 128)
_MIN_CHUNK_BYTES = 2 * 1024 * 1024   # don't split copies below ~2 MiB / chunk


def _flat_layout(total, itemsize):
    """Pick (rows, lanes, nchunks) for a chunked HBM->HBM DMA copy."""
    lanes = 1
    for cand in _LANE_CANDIDATES:
        if total % cand == 0:
            lanes = cand
            break
    rows = total // lanes
    nbytes = total * itemsize
    nchunks = 1
    # Split big copies so v7x's two TensorCores ("parallel" grid axis) each
    # stream part of the slab; keep chunks large enough that the ~0.35 us
    # per-grid-step overhead stays negligible even at 3.2 TB/s.
    for cand in (4, 2):
        if rows % cand == 0 and nbytes // cand >= _MIN_CHUNK_BYTES:
            nchunks = cand
            break
    return rows, lanes, nchunks


def _materialized_copy(x_flat, nchunks):
    """Direct HBM->HBM DMA copy of a contiguous 2-D slab into a fresh buffer."""
    rows, lanes = x_flat.shape
    rows_per_chunk = rows // nchunks
    nbytes = x_flat.size * x_flat.dtype.itemsize

    def kernel(x_ref, o_ref, sem):
        # x_ref / o_ref are raw HBM refs (memory_space=pl.ANY): no VMEM
        # staging, no vreg bounce -- one contiguous DMA per grid step.
        i = pl.program_id(0)
        start = i * rows_per_chunk
        cp = pltpu.make_async_copy(
            x_ref.at[pl.ds(start, rows_per_chunk)],
            o_ref.at[pl.ds(start, rows_per_chunk)],
            sem,
        )
        cp.start()
        cp.wait()

    return pl.pallas_call(
        kernel,
        out_shape=jax.ShapeDtypeStruct((rows, lanes), x_flat.dtype),
        grid=(nchunks,),
        in_specs=[pl.BlockSpec(memory_space=pl.ANY)],
        out_specs=pl.BlockSpec(memory_space=pl.ANY),
        scratch_shapes=[pltpu.SemaphoreType.DMA],
        compiler_params=pltpu.CompilerParams(
            # Chunks are independent -> shard across TensorCores on megacore
            # parts (v7x: 2 TCs sharing HBM).
            dimension_semantics=("parallel",),
        ),
        cost_estimate=pl.CostEstimate(
            flops=0, transcendentals=0, bytes_accessed=2 * nbytes
        ),
    )(x_flat)


def pallas_reshape(x, shape, *, materialize=False):
    """TPU equivalent of `x.view(shape)` for contiguous inputs.

    Default: free, metadata-only reshape (exactly what a contiguous torch
    .view is) -- never copies, never launches a kernel.
    materialize=True: produce a fresh HBM buffer via a Pallas direct-DMA copy
    kernel (documented: this path never aliases its input).
    """
    total = x.size
    out_shape = _resolve_view_shape(total, shape)
    if not materialize:
        return jnp.reshape(x, out_shape)

    rows, lanes, nchunks = _flat_layout(total, x.dtype.itemsize)
    x_flat = jnp.reshape(x, (rows, lanes))        # metadata-only glue
    out_flat = _materialized_copy(x_flat, nchunks)
    return jnp.reshape(out_flat, out_shape)       # metadata-only glue


class Reshape:
    """JAX counterpart of the PyTorch Reshape module used in
    SlabContentDecoder (x.view(self.shape)).  Like .view, it never copies."""

    def __init__(self, *args):
        self.shape = args

    def __call__(self, x):
        return pallas_reshape(x, self.shape)


if __name__ == "__main__":
    key = jax.random.PRNGKey(0)
    # NCHW conv-feature-map style input, consistent with how Reshape is used
    # inside SlabContentDecoder (re-blocking / flattening feature maps).
    x = jax.random.normal(key, (2, 4, 16, 16), dtype=jnp.float32)

    # 1) Flatten: x.view(B, C*H*W)  -- free metadata path (review item #1).
    flat = Reshape(2, 4 * 16 * 16)(x)
    jax.block_until_ready(flat)
    assert flat.shape == (2, 1024) and flat.dtype == x.dtype
    assert bool(jnp.all(flat == jnp.reshape(x, (2, 1024))))

    # 2) Re-block with a -1, as in Reshape(-1, chstart, dims[1], dims[2]).
    reblocked = Reshape(-1, 4, 16, 16)(flat)
    jax.block_until_ready(reblocked)
    assert reblocked.shape == (2, 4, 16, 16)
    assert bool(jnp.all(reblocked == x))

    # 3) Explicitly materialized view: Pallas direct HBM->HBM DMA copy
    #    (single-chunk grid for this small slab).
    mat = pallas_reshape(x, (2, -1), materialize=True)
    jax.block_until_ready(mat)
    assert mat.shape == (2, 1024) and mat.dtype == x.dtype
    assert bool(jnp.all(mat == jnp.reshape(x, (2, 1024))))

    # 4) 4 MiB slab exercising the 2-chunk "parallel" DMA grid.
    y = jax.random.normal(jax.random.PRNGKey(0), (512, 2048), dtype=jnp.float32)
    ymat = pallas_reshape(y, (-1, 512, 2048), materialize=True)
    jax.block_until_ready(ymat)
    assert ymat.shape == (1, 512, 2048) and ymat.dtype == y.dtype
    assert bool(jnp.all(ymat == jnp.reshape(y, (1, 512, 2048))))

    print("KERNEL_OK")
</pallas_src>

<mosaic_0001>
module attributes {stable_mosaic.version = 11 : i64} {
  func.func @kernel(%arg0: i32, %arg1: memref<1x2048xf32, #tpu.memory_space<any>>, %arg2: memref<1x2048xf32, #tpu.memory_space<any>>, %arg3: memref<!tpu.dma_semaphore, #tpu.memory_space<semaphore_mem>>) attributes {dimension_semantics = [#tpu.dimension_semantics<parallel>], iteration_bounds = array<i64: 1>, scalar_prefetch = 0 : i64, scratch_operands = 1 : i64, tpu.core_type = #tpu.core_type<tc>, window_params = [{}, {}]} {
    %c1_i32 = arith.constant 1 : i32
    %0 = arith.muli %arg0, %c1_i32 : i32
    %c0_i32 = arith.constant 0 : i32
    %1 = tpu.memref_slice %arg1[%0, %c0_i32] : memref<1x2048xf32, #tpu.memory_space<any>> -> memref<1x2048xf32, #tpu.memory_space<any>>
    %c0_i32_0 = arith.constant 0 : i32
    %2 = tpu.memref_slice %arg2[%0, %c0_i32_0] : memref<1x2048xf32, #tpu.memory_space<any>> -> memref<1x2048xf32, #tpu.memory_space<any>>
    tpu.enqueue_dma source(%1 : memref<1x2048xf32, #tpu.memory_space<any>>) target(%2 : memref<1x2048xf32, #tpu.memory_space<any>>) target_semaphore(%arg3 : memref<!tpu.dma_semaphore, #tpu.memory_space<semaphore_mem>>)
    %c0_i32_1 = arith.constant 0 : i32
    %3 = tpu.memref_slice %arg1[%0, %c0_i32_1] : memref<1x2048xf32, #tpu.memory_space<any>> -> memref<1x2048xf32, #tpu.memory_space<any>>
    %c0_i32_2 = arith.constant 0 : i32
    %4 = tpu.memref_slice %arg2[%0, %c0_i32_2] : memref<1x2048xf32, #tpu.memory_space<any>> -> memref<1x2048xf32, #tpu.memory_space<any>>
    tpu.wait_dma2 semaphore(%arg3 : memref<!tpu.dma_semaphore, #tpu.memory_space<semaphore_mem>>) src(%3 : memref<1x2048xf32, #tpu.memory_space<any>>) dst(%4 : memref<1x2048xf32, #tpu.memory_space<any>>)
    return
  }
}

</mosaic_0001>

<bundles_post_ra>
// kernel: tpu_custom_call.1
= control target key start
LH: loop header
LB: loop body
LE: loop exit
PB: predicated region body
PF: predicated region fallthrough
CT: control target
= control target key end

     0   :  { %s39_s6 = smov [#allocation2]   ;;  %s40_s7 = smov [#allocation3]   ;;  %s58_s0 = inlined_call_operand.hbm [shape: f32[1,2048], index: 0, kind: input, shape index: {}]   ;;  %s59_s1 = inlined_call_operand.hbm [shape: f32[1,2048], index: 1, kind: output, shape index: {}]  }
   0x1   :  { %s41_s8 = smov 0  }
   0x2   :  { %23 = dma.general %s58_s0, 256, %s59_s1, %s39_s6, %s40_s7, [#allocation4], %s41_s8, 0  }
   0x3   :  { %37 = dma.done.wait [#allocation2], 256 }
   0x4   :  { %38 = vsyncadd [#allocation2], 4294967040 }
   0x5   :  { %27 = vsyncmov [#allocation2] }
   0x8   :  { %s28_s13 = vpop.sfrf %27 }
   0x9   :  { %p33_p0 = scmp.ne.s32.totalorder %s28_s13, 0 }
   0xb   :  { %32 = shalt.err (%p33_p0)  }

</bundles_post_ra>
